<compile_context>
chip_gen: v7x
topology: tpu7x:2x2x1
jax: 0.10.0
libtpu: 0.0.40
codegen_flags: <defaults>
</compile_context>

<pallas_src>
import functools

import jax
import jax.numpy as jnp
from jax.experimental import pallas as pl
from jax.experimental.pallas import tpu as pltpu


def _qnet_kernel(x_ref, w1_ref, w2_ref, w3_ref, b12_ref, b3_ref, o_ref):
    """Fused n-critic 3-layer MLP, critics packed along the lane axis."""
    x = x_ref[...].astype(jnp.bfloat16)                      # [TB, in_dim]

    b1 = b12_ref[0:1, :]                                     # [1, n*ch] f32
    b2 = b12_ref[1:2, :]                                     # [1, n*ch] f32

    # Layer 1: one dot covering both critics.
    h1 = jnp.dot(x, w1_ref[...], preferred_element_type=jnp.float32) + b1
    h1 = jnp.maximum(h1, 0.0)                                # f32 elementwise

    # Layer 2: block-diagonal W2 keeps the critics independent.
    h2 = jnp.dot(h1.astype(jnp.bfloat16), w2_ref[...],
                 preferred_element_type=jnp.float32) + b2
    h2 = jnp.maximum(h2, 0.0)

    # Layer 3: block-column W3 -> [TB, n_critics] in one MXU dot + one store.
    o_ref[...] = (jnp.dot(h2.astype(jnp.bfloat16), w3_ref[...],
                          preferred_element_type=jnp.float32)
                  + b3_ref[...])


def init_critic_params(key, in_dim, ch):
    """One critic's params, mimicking nn.Linear's U(-1/sqrt(fan_in), +) init.

    Weights are stored as [in_features, out_features] (transpose of PyTorch).
    """
    ks = jax.random.split(key, 6)

    def lin(kw, kb, fan_in, fan_out):
        bound = float(fan_in) ** -0.5
        w = jax.random.uniform(kw, (fan_in, fan_out), jnp.float32, -bound, bound)
        b = jax.random.uniform(kb, (fan_out,), jnp.float32, -bound, bound)
        return w, b

    w1, b1 = lin(ks[0], ks[1], in_dim, ch)
    w2, b2 = lin(ks[2], ks[3], ch, ch)
    w3, b3 = lin(ks[4], ks[5], ch, 1)
    return (w1, b1, w2, b2, w3, b3)


def pack_critic_params(critic_params):
    """Pack per-critic (w1, b1, w2, b2, w3, b3) along the lane axis.

    Returns (w1, w2blk, w3cols, b12, b3):
      w1     [in_dim, n*ch]   bf16
      w2blk  [n*ch, n*ch]     bf16  (block-diagonal)
      w3cols [n*ch, n]        bf16  (block-column)
      b12    [2, n*ch]        f32   (row 0 = b1, row 1 = b2)
      b3     [1, n]           f32
    """
    n = len(critic_params)
    ch = critic_params[0][1].shape[0]
    f32, bf16 = jnp.float32, jnp.bfloat16

    w1 = jnp.concatenate([p[0] for p in critic_params], axis=1).astype(bf16)

    w2blk = jnp.zeros((n * ch, n * ch), f32)
    w3cols = jnp.zeros((n * ch, n), f32)
    for c, p in enumerate(critic_params):
        w2blk = w2blk.at[c * ch:(c + 1) * ch, c * ch:(c + 1) * ch].set(p[2])
        w3cols = w3cols.at[c * ch:(c + 1) * ch, c].set(p[4].reshape(-1))
    w2blk = w2blk.astype(bf16)
    w3cols = w3cols.astype(bf16)

    b12 = jnp.stack([
        jnp.concatenate([p[1].reshape(-1) for p in critic_params]),
        jnp.concatenate([p[3].reshape(-1) for p in critic_params]),
    ]).astype(f32)
    b3 = jnp.concatenate([p[5].reshape(-1) for p in critic_params]).reshape(1, n).astype(f32)
    return (w1, w2blk, w3cols, b12, b3)


@functools.partial(jax.jit, static_argnames=("batch_tile",))
def soft_q_forward(obs, act, packed, batch_tile=512):
    """obs: [B, obs_dim], act: [B, act_dim] -> q: [B, n_critics] (float32)."""
    w1, w2blk, w3cols, b12, b3 = packed
    B = obs.shape[0]
    in_dim = w1.shape[0]
    n_cch = w2blk.shape[0]                        # n_critics * ch
    n_critics = b3.shape[1]

    assert batch_tile % 8 == 0, "batch_tile must be a multiple of 8"
    # tb == B (block == full array) or tb % 8 == 0; a ragged last tile relies
    # on Pallas OOB padding (extra rows computed then discarded) -> correct.
    tb = B if B <= batch_tile else batch_tile
    grid = (pl.cdiv(B, tb),)

    # Tiny wrapper-side concat (16 floats per row) so layer 1 is one K dot.
    x = jnp.concatenate([obs, act], axis=1).astype(jnp.float32)

    resident = lambda shape: pl.BlockSpec(shape, lambda i: (0,) * len(shape))
    return pl.pallas_call(
        _qnet_kernel,
        out_shape=jax.ShapeDtypeStruct((B, n_critics), jnp.float32),
        grid=grid,
        in_specs=[
            pl.BlockSpec((tb, in_dim), lambda i: (i, 0)),
            resident((in_dim, n_cch)),            # weights stay VMEM-resident
            resident((n_cch, n_cch)),
            resident((n_cch, n_critics)),
            resident((2, n_cch)),                 # packed b1 / b2
            resident((1, n_critics)),             # b3 for all critics
        ],
        out_specs=pl.BlockSpec((tb, n_critics), lambda i: (i, 0)),
        compiler_params=pltpu.CompilerParams(
            dimension_semantics=("parallel",),    # v7x: shards batch tiles
        ),
    )(x, w1, w2blk, w3cols, b12, b3)


def _reference_f32(obs, act, critic_params):
    x = jnp.concatenate([obs, act], axis=1).astype(jnp.float32)
    outs = []
    for (w1, b1, w2, b2, w3, b3) in critic_params:
        h1 = jax.nn.relu(x @ w1 + b1)
        h2 = jax.nn.relu(h1 @ w2 + b2)
        outs.append(h2 @ w3 + b3)
    return jnp.concatenate(outs, axis=1)


def _reference_bf16_mxu(obs, act, critic_params):
    """Same math as the kernel: bf16 MXU operands, f32 accumulate/elementwise."""
    bf16, f32 = jnp.bfloat16, jnp.float32
    x = jnp.concatenate([obs, act], axis=1).astype(bf16)
    outs = []
    for (w1, b1, w2, b2, w3, b3) in critic_params:
        h1 = jax.nn.relu(jnp.dot(x, w1.astype(bf16), preferred_element_type=f32) + b1)
        h2 = jax.nn.relu(jnp.dot(h1.astype(bf16), w2.astype(bf16),
                                 preferred_element_type=f32) + b2)
        outs.append(jnp.dot(h2.astype(bf16), w3.astype(bf16),
                            preferred_element_type=f32) + b3)
    return jnp.concatenate(outs, axis=1)


if __name__ == "__main__":
    # Small shapes consistent with the module: obs_dim=12, act_dim=4, ch=32,
    # batch=8, with the two SAC critics fused into one lane-packed call.
    B, OBS_DIM, ACT_DIM, CH, N_CRITICS = 8, 12, 4, 32, 2
    key = jax.random.PRNGKey(0)
    k_obs, k_act, k_q1, k_q2 = jax.random.split(key, 4)

    obs = jax.random.normal(k_obs, (B, OBS_DIM), jnp.float32)
    act = jax.random.normal(k_act, (B, ACT_DIM), jnp.float32)
    critic_params = [init_critic_params(k, OBS_DIM + ACT_DIM, CH) for k in (k_q1, k_q2)]
    packed = pack_critic_params(critic_params)

    q = soft_q_forward(obs, act, packed)
    q = jax.block_until_ready(q)
    assert q.shape == (B, N_CRITICS)

    q_bf16_ref = _reference_bf16_mxu(obs, act, critic_params)
    q_f32_ref = _reference_f32(obs, act, critic_params)
    assert jnp.allclose(q, q_bf16_ref, atol=1e-3, rtol=1e-3), "mismatch vs bf16-matched reference"
    assert jnp.allclose(q, q_f32_ref, atol=5e-2, rtol=5e-2), "mismatch vs f32 reference"

    print("KERNEL_OK")
</pallas_src>

<mosaic_0001>
module attributes {stable_mosaic.version = 11 : i64} {
  func.func @_qnet_kernel(%arg0: i32, %arg1: memref<8x16xf32, #tpu.memory_space<vmem>>, %arg2: memref<16x64xbf16, #tpu.memory_space<vmem>>, %arg3: memref<64x64xbf16, #tpu.memory_space<vmem>>, %arg4: memref<64x2xbf16, #tpu.memory_space<vmem>>, %arg5: memref<2x64xf32, #tpu.memory_space<vmem>>, %arg6: memref<1x2xf32, #tpu.memory_space<vmem>>, %arg7: memref<8x2xf32, #tpu.memory_space<vmem>>) attributes {dimension_semantics = [#tpu.dimension_semantics<parallel>], iteration_bounds = array<i64: 1>, scalar_prefetch = 0 : i64, scratch_operands = 0 : i64, tpu.core_type = #tpu.core_type<tc>, window_params = [{transform_indices = @transform_0, window_bounds = array<i64: 8, 16>}, {pipeline_mode = #tpu.pipeline_mode<synchronous>, transform_indices = @transform_1, window_bounds = array<i64: 16, 64>}, {pipeline_mode = #tpu.pipeline_mode<synchronous>, transform_indices = @transform_2, window_bounds = array<i64: 64, 64>}, {pipeline_mode = #tpu.pipeline_mode<synchronous>, transform_indices = @transform_3, window_bounds = array<i64: 64, 2>}, {pipeline_mode = #tpu.pipeline_mode<synchronous>, transform_indices = @transform_4, window_bounds = array<i64: 2, 64>}, {pipeline_mode = #tpu.pipeline_mode<synchronous>, transform_indices = @transform_5, window_bounds = array<i64: 1, 2>}, {transform_indices = @transform_6, window_bounds = array<i64: 8, 2>}]} {
    %c0 = arith.constant 0 : index
    %c0_0 = arith.constant 0 : index
    %0 = vector.load %arg1[%c0, %c0_0] : memref<8x16xf32, #tpu.memory_space<vmem>>, vector<8x16xf32>
    %1 = arith.truncf %0 : vector<8x16xf32> to vector<8x16xbf16>
    %c0_1 = arith.constant 0 : index
    %c0_2 = arith.constant 0 : index
    %2 = vector.load %arg5[%c0_1, %c0_2] : memref<2x64xf32, #tpu.memory_space<vmem>>, vector<1x64xf32>
    %c1 = arith.constant 1 : index
    %c0_3 = arith.constant 0 : index
    %3 = vector.load %arg5[%c1, %c0_3] : memref<2x64xf32, #tpu.memory_space<vmem>>, vector<1x64xf32>
    %c0_4 = arith.constant 0 : index
    %c0_5 = arith.constant 0 : index
    %4 = vector.load %arg2[%c0_4, %c0_5] : memref<16x64xbf16, #tpu.memory_space<vmem>>, vector<16x64xbf16>
    %cst = arith.constant dense<0.000000e+00> : vector<8x64xf32>
    %5 = tpu.matmul %1, %4, %cst {dimension_numbers = #tpu.dot_dimension_numbers<[1], [0], [0], [1], [0, 0, 1, 1], [], []>} : vector<8x16xbf16>, vector<16x64xbf16>, vector<8x64xf32> -> vector<8x64xf32>
    %6 = vector.broadcast %2 : vector<1x64xf32> to vector<8x64xf32>
    %7 = arith.addf %5, %6 : vector<8x64xf32>
    %cst_6 = arith.constant 0.000000e+00 : f32
    %8 = vector.broadcast %cst_6 : f32 to vector<8x64xf32>
    %9 = arith.maximumf %7, %8 : vector<8x64xf32>
    %10 = arith.truncf %9 : vector<8x64xf32> to vector<8x64xbf16>
    %c0_7 = arith.constant 0 : index
    %c0_8 = arith.constant 0 : index
    %11 = vector.load %arg3[%c0_7, %c0_8] : memref<64x64xbf16, #tpu.memory_space<vmem>>, vector<64x64xbf16>
    %cst_9 = arith.constant dense<0.000000e+00> : vector<8x64xf32>
    %12 = tpu.matmul %10, %11, %cst_9 {dimension_numbers = #tpu.dot_dimension_numbers<[1], [0], [0], [1], [0, 0, 1, 1], [], []>} : vector<8x64xbf16>, vector<64x64xbf16>, vector<8x64xf32> -> vector<8x64xf32>
    %13 = vector.broadcast %3 : vector<1x64xf32> to vector<8x64xf32>
    %14 = arith.addf %12, %13 : vector<8x64xf32>
    %cst_10 = arith.constant 0.000000e+00 : f32
    %15 = vector.broadcast %cst_10 : f32 to vector<8x64xf32>
    %16 = arith.maximumf %14, %15 : vector<8x64xf32>
    %17 = arith.truncf %16 : vector<8x64xf32> to vector<8x64xbf16>
    %c0_11 = arith.constant 0 : index
    %c0_12 = arith.constant 0 : index
    %18 = vector.load %arg4[%c0_11, %c0_12] : memref<64x2xbf16, #tpu.memory_space<vmem>>, vector<64x2xbf16>
    %cst_13 = arith.constant dense<0.000000e+00> : vector<8x2xf32>
    %19 = tpu.matmul %17, %18, %cst_13 {dimension_numbers = #tpu.dot_dimension_numbers<[1], [0], [0], [1], [0, 0, 1, 1], [], []>} : vector<8x64xbf16>, vector<64x2xbf16>, vector<8x2xf32> -> vector<8x2xf32>
    %c0_14 = arith.constant 0 : index
    %c0_15 = arith.constant 0 : index
    %20 = vector.load %arg6[%c0_14, %c0_15] : memref<1x2xf32, #tpu.memory_space<vmem>>, vector<1x2xf32>
    %21 = vector.broadcast %20 : vector<1x2xf32> to vector<8x2xf32>
    %22 = arith.addf %19, %21 : vector<8x2xf32>
    %c0_16 = arith.constant 0 : index
    %c0_17 = arith.constant 0 : index
    %23 = vector.load %arg7[%c0_16, %c0_17] : memref<8x2xf32, #tpu.memory_space<vmem>>, vector<8x2xf32>
    tpu.vector_store %arg7[%c0_16, %c0_17], %22 {strides = array<i32>} : memref<8x2xf32, #tpu.memory_space<vmem>>, vector<8x2xf32>,
    return
  }
  func.func @transform_0(%arg0: i32) -> (i32, i32) {
    %c0_i32 = arith.constant 0 : i32
    %c0_i32_0 = arith.constant 0 : i32
    return %arg0, %c0_i32 : i32, i32
  }
  func.func @transform_1(%arg0: i32) -> (i32, i32) {
    %c0_i32 = arith.constant 0 : i32
    %c0_i32_0 = arith.constant 0 : i32
    %c0_i32_1 = arith.constant 0 : i32
    return %c0_i32, %c0_i32_0 : i32, i32
  }
  func.func @transform_2(%arg0: i32) -> (i32, i32) {
    %c0_i32 = arith.constant 0 : i32
    %c0_i32_0 = arith.constant 0 : i32
    %c0_i32_1 = arith.constant 0 : i32
    return %c0_i32, %c0_i32_0 : i32, i32
  }
  func.func @transform_3(%arg0: i32) -> (i32, i32) {
    %c0_i32 = arith.constant 0 : i32
    %c0_i32_0 = arith.constant 0 : i32
    %c0_i32_1 = arith.constant 0 : i32
    return %c0_i32, %c0_i32_0 : i32, i32
  }
  func.func @transform_4(%arg0: i32) -> (i32, i32) {
    %c0_i32 = arith.constant 0 : i32
    %c0_i32_0 = arith.constant 0 : i32
    %c0_i32_1 = arith.constant 0 : i32
    return %c0_i32, %c0_i32_0 : i32, i32
  }
  func.func @transform_5(%arg0: i32) -> (i32, i32) {
    %c0_i32 = arith.constant 0 : i32
    %c0_i32_0 = arith.constant 0 : i32
    %c0_i32_1 = arith.constant 0 : i32
    return %c0_i32, %c0_i32_0 : i32, i32
  }
  func.func @transform_6(%arg0: i32) -> (i32, i32) {
    %c0_i32 = arith.constant 0 : i32
    %c0_i32_0 = arith.constant 0 : i32
    return %arg0, %c0_i32 : i32, i32
  }
}

</mosaic_0001>

<bundles_post_ra>
// kernel: soft_q_forward.1
= control target key start
LH: loop header
LB: loop body
LE: loop exit
PB: predicated region body
PF: predicated region fallthrough
CT: control target
= control target key end

     0   :  { %v324_v0 = vmov 0.0   ;;  %vm325_vm0 = vmmov 0   ;;  %vm40_vm1 = vcmask 130048   ;;  %vm122_vm2 = vcmask 523264   ;;  %s405_s1 = inlined_call_operand.vmem [shape: bf16[16,64], index: 1, kind: input, shape index: {}]   ;;  %s406_s0 = inlined_call_operand.vmem [shape: f32[8,16], index: 0, kind: input, shape index: {}]   ;;  %s407_s2 = inlined_call_operand.vmem [shape: bf16[64,64], index: 2, kind: input, shape index: {}]   ;;  %s408_s3 = inlined_call_operand.vmem [shape: bf16[64,2], index: 3, kind: input, shape index: {}]   ;;  %s409_s4 = inlined_call_operand.vmem [shape: f32[2,64], index: 4, kind: input, shape index: {}]   ;;  %s410_s5 = inlined_call_operand.vmem [shape: f32[1,2], index: 5, kind: input, shape index: {}]   ;;  %s411_s6 = inlined_call_operand.vmem [shape: f32[8,2], index: 6, kind: output, shape index: {}]  }
   0x1   :  { %283 = vmatprep.subr.bf16.mxu0 %v324_v0  ;;  %v315_v1 = vld [vmem:[%s405_s1] sm:$0xff]   ;;  %285 = vmatprep.mubr.msk.bf16.mxu0 %vm325_vm0, %v324_v0  ;;  %v317_v5 = vld [vmem:[%s407_s2 + $0x8] sm:$0xff]   ;;  %v318_v6 = vld [vmem:[%s407_s2 + $0x10] sm:$0xff]   ;;  %vm250_vm3 = vcmask 15360  }
   0x2   :  { %v24_v2 = vld [vmem:[%s406_s0] sm:$0xff]  ;;  %289 = vmatprep.subr.bf16.mxu1 %v324_v0  ;;  %297 = vmatprep.mubr.msk.bf16.mxu1 %vm325_vm0, %v324_v0  ;;  %v319_v7 = vld [vmem:[%s407_s2 + $0x18] sm:$0xff]   ;;  %v321_v9 = vld [vmem:[%s408_s3 + $0x8] sm:$0xff]  }
   0x3   :  { %284 = vmatpush3.bf16.msra.mxu0 %v315_v1  ;;  %v25_v3 = vpack.c.bf16 %v24_v2, %v24_v2  ;;  %v316_v4 = vld [vmem:[%s407_s2] sm:$0xff]   ;;  %v322_v18 = vld [vmem:[%s408_s3 + $0x10] sm:$0xff]   ;;  %v323_v19 = vld [vmem:[%s408_s3 + $0x18] sm:$0xff]  }
   0x4   :  { %301 = vmatprep.subr.bf16.mxu0 %v324_v0  ;;  %290 = vmatpush3.bf16.msra.mxu1 %v316_v4  ;;  %v320_v8 = vld [vmem:[%s408_s3] sm:$0xff]  }
   0x5   :  { %291 = vmatprep.subr.bf16.mxu1 %v324_v0  ;;  %v256_v10 = vld [vmem:[%s409_s4] ss:$0 sm:$0xff]  ;;  %v259_v20 = vld [vmem:[%s409_s4 + $0x1] ss:$0 sm:$0xff] }
   0x6   :  { %286 = vmatmul.mubr.msk.bf16.vlgmr.msra.gmra.mrb[0].mxu0 %vm40_vm1, %v25_v3  ;;  %v265_v28 = vld [vmem:[%s410_s5] ss:$0 sm:$0xff] }
   0x7   :  { %309 = vmatprep.mubr.msk.bf16.mxu0 %vm325_vm0, %v324_v0  ;;  %302 = vmatpush3.bf16.msra.mxu0 %v320_v8 }
   0x8   :  { %292 = vmatpush3.bf16.msra.mxu1 %v317_v5  ;;  %303 = vmatprep.subr.bf16.mxu0 %v324_v0 }
   0x9   :  { %293 = vmatprep.subr.bf16.mxu1 %v324_v0 }
   0xb   :  { %304 = vmatpush3.bf16.msra.mxu0 %v321_v9 }
   0xc   :  { %294 = vmatpush3.bf16.msra.mxu1 %v318_v6  ;;  %305 = vmatprep.subr.bf16.mxu0 %v324_v0 }
   0xd   :  { %295 = vmatprep.subr.bf16.mxu1 %v324_v0 }
   0xf   :  { %306 = vmatpush3.bf16.msra.mxu0 %v322_v18 }
  0x10   :  { %296 = vmatpush3.bf16.msra.mxu1 %v319_v7  ;;  %307 = vmatprep.subr.bf16.mxu0 %v324_v0 }
  0x13   :  { %308 = vmatpush3.bf16.msra.mxu0 %v323_v19 }
  0xd9   :  { %v78_v11 = vpop.f32.mrb[0].mxu0 }
  0xda   :  { %v79_v12 = vadd.f32 %v256_v10, %v78_v11  ;;  %v287_v13 = vpop.f32.mrb[1].mxu0 }
  0xdb   :  { %v81_v14 = vpop.f32.mrb[2].mxu0 }
  0xdc   :  { %v84_v15 = vmax.f32 %v79_v12, 0.0  ;;  %v288_v16 = vpop.f32.mrb[3].mxu0 }
  0xde   :  { %v85_v17 = vpack.c.bf16 %v84_v15, %v84_v15 }
  0xe0   :  { %298 = vmatmul.mubr.msk.bf16.vlgmr.msra.gmra.mrb[0].mxu1 %vm122_vm2, %v85_v17 }
 0x1b3   :  { %v160_v21 = vpop.f32.mrb[0].mxu1 }
 0x1b4   :  { %v161_v22 = vadd.f32 %v259_v20, %v160_v21  ;;  %v299_v23 = vpop.f32.mrb[1].mxu1 }
 0x1b5   :  { %v163_v24 = vpop.f32.mrb[2].mxu1 }
 0x1b6   :  { %v166_v25 = vmax.f32 %v161_v22, 0.0  ;;  %v300_v26 = vpop.f32.mrb[3].mxu1 }
 0x1b8   :  { %v167_v27 = vpack.c.bf16 %v166_v25, %v166_v25 }
 0x1ba   :  { %310 = vmatmul.mubr.msk.bf16.vlgmr.msra.gmra.mrb[4].mxu0 %vm122_vm2, %v167_v27 }
 0x28d   :  { %v244_v29 = vpop.f32.mrb[4].mxu0 }
 0x28e   :  { %v245_v30 = vadd.f32 %v265_v28, %v244_v29  ;;  %v311_v31 = vpop.f32.mrb[5].mxu0 }
 0x28f   :  { %v247_v32 = vpop.f32.mrb[6].mxu0 }
 0x290   :  { %251 = vst.msk [vmem:[%s411_s6] sm:$0xff] %vm250_vm3, %v245_v30  ;;  %v312_v33 = vpop.f32.mrb[7].mxu0 }

</bundles_post_ra>
